<compile_context>
chip_gen: v5e
topology: v5e:2x2
jax: 0.10.0
libtpu: 0.0.40
codegen_flags: <defaults>
</compile_context>

<pallas_src>
import jax
import jax.numpy as jnp
from jax.experimental import pallas as pl
from jax.experimental.pallas import tpu as pltpu

HIDDEN = 256          # fixed by the PyTorch module (fc1/fc2 width)
LANE = 128            # TPU lane width
MAX_TILE_B = 1024     # batch tile upper bound (amortizes ~0.35us/step grid overhead)
SMALL_B = 256         # at/below this, use a single full-extent batch block (no padding)


def _round_up(n, m):
    return ((n + m - 1) // m) * m


def _choose_tile_b(B):
    if B <= SMALL_B:
        # Single grid step; a block equal to the full array dims is always legal,
        # so no batch padding is needed for small (acting-time) batches.
        return B
    # Training-sized batches: multiples of 256 keep the MXU M axis fully fed
    # (v6e/v7x 256-wide MXU), and >=2 grid steps feed both v7x TensorCores.
    tile = _round_up(-(-B // 2), 256)
    return min(tile, MAX_TILE_B)


def _dqn_kernel(x_ref, w1_ref, b1_ref, w2_ref, b2_ref, w3_ref, b3_ref, out_ref):
    # x arrives f32 from HBM; cast to bf16 only for the MXU operands.
    x = x_ref[...].astype(jnp.bfloat16)
    # fc1 + relu  (bf16 MXU operands, f32 accumulation / elementwise)
    h1 = jnp.dot(x, w1_ref[...], preferred_element_type=jnp.float32)
    h1 = jnp.maximum(h1 + b1_ref[...], 0.0)
    # fc2 + relu
    h2 = jnp.dot(h1.astype(jnp.bfloat16), w2_ref[...], preferred_element_type=jnp.float32)
    h2 = jnp.maximum(h2 + b2_ref[...], 0.0)
    # fc3 (no activation) — lane-dense (128-padded) output tile, unmasked store
    out = jnp.dot(h2.astype(jnp.bfloat16), w3_ref[...], preferred_element_type=jnp.float32)
    out_ref[...] = out + b3_ref[...]


def prepare_params(params):
    """One-time conversion of f32 PyTorch-style params into kernel-ready operands.

    Returns a dict with:
      w1  [in, 256]      bf16          b1  [1, 256]      f32
      w2  [256, 256]     bf16          b2  [1, 256]      f32
      w3p [256, out_pad] bf16 (padded) b3p [1, out_pad]  f32 (padded)
    """
    w1, b1 = params["w1"], params["b1"]
    w2, b2 = params["w2"], params["b2"]
    w3, b3 = params["w3"], params["b3"]
    hidden = w1.shape[1]
    output_dim = w3.shape[1]
    out_pad = _round_up(output_dim, LANE)

    w3p = jnp.zeros((hidden, out_pad), jnp.bfloat16).at[:, :output_dim].set(
        w3.astype(jnp.bfloat16))
    b3p = jnp.zeros((1, out_pad), jnp.float32).at[:, :output_dim].set(b3)
    return {
        "w1": w1.astype(jnp.bfloat16), "b1": b1.astype(jnp.float32),
        "w2": w2.astype(jnp.bfloat16), "b2": b2.astype(jnp.float32),
        "w3p": w3p, "b3p": b3p,
    }


def dq_network_forward(x, kparams, output_dim):
    """Fused 3-layer MLP forward pass.

    x: [B, input_dim] float32
    kparams: output of prepare_params() (weights pre-cast to bf16, fc3 pre-padded)
    output_dim: the true (unpadded) number of actions.
    Returns: [B, output_dim] float32
    """
    w1, b1 = kparams["w1"], kparams["b1"]
    w2, b2 = kparams["w2"], kparams["b2"]
    w3p, b3p = kparams["w3p"], kparams["b3p"]

    B, input_dim = x.shape
    hidden = w1.shape[1]
    out_pad = w3p.shape[1]

    tile_b = _choose_tile_b(B)
    b_pad = _round_up(B, tile_b)
    xp = x if b_pad == B else jnp.pad(x, ((0, b_pad - B), (0, 0)))

    grid = (b_pad // tile_b,)

    flops = 2 * b_pad * (input_dim * hidden + hidden * hidden + hidden * out_pad)
    bytes_accessed = (
        b_pad * input_dim * 4                               # x (f32)
        + (w1.size + w2.size + w3p.size) * 2                # bf16 weights
        + (b1.size + b2.size + b3p.size) * 4                # f32 biases
        + b_pad * out_pad * 4                               # output (f32)
    )

    out_padded = pl.pallas_call(
        _dqn_kernel,
        out_shape=jax.ShapeDtypeStruct((b_pad, out_pad), jnp.float32),
        grid=grid,
        in_specs=[
            # x: tiled along batch only (last dim full-extent, no K padding)
            pl.BlockSpec((tile_b, input_dim), lambda i: (i, 0)),
            # weights / biases: same block every step -> VMEM-resident across the grid
            pl.BlockSpec((input_dim, hidden), lambda i: (0, 0)),
            pl.BlockSpec((1, hidden), lambda i: (0, 0)),
            pl.BlockSpec((hidden, hidden), lambda i: (0, 0)),
            pl.BlockSpec((1, hidden), lambda i: (0, 0)),
            pl.BlockSpec((hidden, out_pad), lambda i: (0, 0)),
            pl.BlockSpec((1, out_pad), lambda i: (0, 0)),
        ],
        out_specs=pl.BlockSpec((tile_b, out_pad), lambda i: (i, 0)),
        compiler_params=pltpu.CompilerParams(
            dimension_semantics=("parallel",),
            vmem_limit_bytes=32 * 1024 * 1024,
        ),
        cost_estimate=pl.CostEstimate(
            flops=flops, transcendentals=0, bytes_accessed=bytes_accessed),
    )(xp, w1, b1, w2, b2, w3p, b3p)

    return out_padded[:B, :output_dim]


def init_params(key, input_dim, output_dim, hidden=HIDDEN):
    """Deterministic f32 init mimicking PyTorch nn.Linear default (uniform +/- 1/sqrt(fan_in)).
    Weights stored [fan_in, fan_out] (transpose of PyTorch's [out, in]); biases [1, fan_out]."""
    ks = jax.random.split(key, 6)

    def lin(kw, kb, fan_in, fan_out):
        bound = 1.0 / jnp.sqrt(jnp.float32(fan_in))
        w = jax.random.uniform(kw, (fan_in, fan_out), jnp.float32, -bound, bound)
        b = jax.random.uniform(kb, (1, fan_out), jnp.float32, -bound, bound)
        return w, b

    w1, b1 = lin(ks[0], ks[1], input_dim, hidden)
    w2, b2 = lin(ks[2], ks[3], hidden, hidden)
    w3, b3 = lin(ks[4], ks[5], hidden, output_dim)
    return {"w1": w1, "b1": b1, "w2": w2, "b2": b2, "w3": w3, "b3": b3}


def reference_forward_bf16(x, p):
    """Pure-JAX reference with the same bf16-operand / f32-accumulate recipe as the kernel."""
    h1 = jnp.dot(x.astype(jnp.bfloat16), p["w1"].astype(jnp.bfloat16),
                 preferred_element_type=jnp.float32)
    h1 = jnp.maximum(h1 + p["b1"], 0.0)
    h2 = jnp.dot(h1.astype(jnp.bfloat16), p["w2"].astype(jnp.bfloat16),
                 preferred_element_type=jnp.float32)
    h2 = jnp.maximum(h2 + p["b2"], 0.0)
    return jnp.dot(h2.astype(jnp.bfloat16), p["w3"].astype(jnp.bfloat16),
                   preferred_element_type=jnp.float32) + p["b3"]


def reference_forward_f32(x, p):
    """Full-precision reference of the original PyTorch forward."""
    h1 = jnp.maximum(x @ p["w1"] + p["b1"], 0.0)
    h2 = jnp.maximum(h1 @ p["w2"] + p["b2"], 0.0)
    return h2 @ p["w3"] + p["b3"]


if __name__ == "__main__":
    key = jax.random.PRNGKey(0)
    k_param, k_x = jax.random.split(key)

    batch = 8
    input_dim = 64     # e.g. state-embedding dimension
    output_dim = 16    # e.g. number of game actions

    params = init_params(k_param, input_dim, output_dim)
    kparams = prepare_params(params)   # one-time: bf16 cast + fc3 output padding
    x = jax.random.normal(k_x, (batch, input_dim), dtype=jnp.float32)

    out = dq_network_forward(x, kparams, output_dim)
    out = jax.block_until_ready(out)
    assert out.shape == (batch, output_dim)

    # Matches the bf16-operand / f32-accumulate recipe used inside the kernel.
    ref_bf16 = reference_forward_bf16(x, params)
    assert jnp.allclose(out, ref_bf16, atol=2e-2, rtol=2e-2), "mismatch vs bf16 JAX reference"

    # Loose check against the full-f32 PyTorch-equivalent forward (bf16 weights lose ~3 digits).
    ref_f32 = reference_forward_f32(x, params)
    assert jnp.allclose(out, ref_f32, atol=5e-2, rtol=5e-2), "mismatch vs f32 reference"

    print("KERNEL_OK")
</pallas_src>

<mosaic_0001>
module attributes {stable_mosaic.version = 11 : i64} {
  func.func @_dqn_kernel(%arg0: i32, %arg1: memref<8x64xf32, #tpu.memory_space<vmem>>, %arg2: memref<64x256xbf16, #tpu.memory_space<vmem>>, %arg3: memref<1x256xf32, #tpu.memory_space<vmem>>, %arg4: memref<256x256xbf16, #tpu.memory_space<vmem>>, %arg5: memref<1x256xf32, #tpu.memory_space<vmem>>, %arg6: memref<256x128xbf16, #tpu.memory_space<vmem>>, %arg7: memref<1x128xf32, #tpu.memory_space<vmem>>, %arg8: memref<8x128xf32, #tpu.memory_space<vmem>>) attributes {dimension_semantics = [#tpu.dimension_semantics<parallel>], iteration_bounds = array<i64: 1>, scalar_prefetch = 0 : i64, scratch_operands = 0 : i64, tpu.core_type = #tpu.core_type<tc>, window_params = [{transform_indices = @transform_0, window_bounds = array<i64: 8, 64>}, {pipeline_mode = #tpu.pipeline_mode<synchronous>, transform_indices = @transform_1, window_bounds = array<i64: 64, 256>}, {pipeline_mode = #tpu.pipeline_mode<synchronous>, transform_indices = @transform_2, window_bounds = array<i64: 1, 256>}, {pipeline_mode = #tpu.pipeline_mode<synchronous>, transform_indices = @transform_3, window_bounds = array<i64: 256, 256>}, {pipeline_mode = #tpu.pipeline_mode<synchronous>, transform_indices = @transform_4, window_bounds = array<i64: 1, 256>}, {pipeline_mode = #tpu.pipeline_mode<synchronous>, transform_indices = @transform_5, window_bounds = array<i64: 256, 128>}, {pipeline_mode = #tpu.pipeline_mode<synchronous>, transform_indices = @transform_6, window_bounds = array<i64: 1, 128>}, {transform_indices = @transform_7, window_bounds = array<i64: 8, 128>}]} {
    %c0 = arith.constant 0 : index
    %c0_0 = arith.constant 0 : index
    %0 = vector.load %arg1[%c0, %c0_0] : memref<8x64xf32, #tpu.memory_space<vmem>>, vector<8x64xf32>
    %1 = arith.truncf %0 : vector<8x64xf32> to vector<8x64xbf16>
    %c0_1 = arith.constant 0 : index
    %c0_2 = arith.constant 0 : index
    %2 = vector.load %arg2[%c0_1, %c0_2] : memref<64x256xbf16, #tpu.memory_space<vmem>>, vector<64x256xbf16>
    %cst = arith.constant dense<0.000000e+00> : vector<8x256xf32>
    %3 = tpu.matmul %1, %2, %cst {dimension_numbers = #tpu.dot_dimension_numbers<[1], [0], [0], [1], [0, 0, 1, 1], [], []>} : vector<8x64xbf16>, vector<64x256xbf16>, vector<8x256xf32> -> vector<8x256xf32>
    %c0_3 = arith.constant 0 : index
    %c0_4 = arith.constant 0 : index
    %4 = vector.load %arg3[%c0_3, %c0_4] : memref<1x256xf32, #tpu.memory_space<vmem>>, vector<1x256xf32>
    %5 = vector.broadcast %4 : vector<1x256xf32> to vector<8x256xf32>
    %6 = arith.addf %3, %5 : vector<8x256xf32>
    %cst_5 = arith.constant 0.000000e+00 : f32
    %7 = vector.broadcast %cst_5 : f32 to vector<8x256xf32>
    %8 = arith.maximumf %6, %7 : vector<8x256xf32>
    %9 = arith.truncf %8 : vector<8x256xf32> to vector<8x256xbf16>
    %c0_6 = arith.constant 0 : index
    %c0_7 = arith.constant 0 : index
    %10 = vector.load %arg4[%c0_6, %c0_7] : memref<256x256xbf16, #tpu.memory_space<vmem>>, vector<256x256xbf16>
    %cst_8 = arith.constant dense<0.000000e+00> : vector<8x256xf32>
    %11 = tpu.matmul %9, %10, %cst_8 {dimension_numbers = #tpu.dot_dimension_numbers<[1], [0], [0], [1], [0, 0, 1, 1], [], []>} : vector<8x256xbf16>, vector<256x256xbf16>, vector<8x256xf32> -> vector<8x256xf32>
    %c0_9 = arith.constant 0 : index
    %c0_10 = arith.constant 0 : index
    %12 = vector.load %arg5[%c0_9, %c0_10] : memref<1x256xf32, #tpu.memory_space<vmem>>, vector<1x256xf32>
    %13 = vector.broadcast %12 : vector<1x256xf32> to vector<8x256xf32>
    %14 = arith.addf %11, %13 : vector<8x256xf32>
    %cst_11 = arith.constant 0.000000e+00 : f32
    %15 = vector.broadcast %cst_11 : f32 to vector<8x256xf32>
    %16 = arith.maximumf %14, %15 : vector<8x256xf32>
    %17 = arith.truncf %16 : vector<8x256xf32> to vector<8x256xbf16>
    %c0_12 = arith.constant 0 : index
    %c0_13 = arith.constant 0 : index
    %18 = vector.load %arg6[%c0_12, %c0_13] : memref<256x128xbf16, #tpu.memory_space<vmem>>, vector<256x128xbf16>
    %cst_14 = arith.constant dense<0.000000e+00> : vector<8x128xf32>
    %19 = tpu.matmul %17, %18, %cst_14 {dimension_numbers = #tpu.dot_dimension_numbers<[1], [0], [0], [1], [0, 0, 1, 1], [], []>} : vector<8x256xbf16>, vector<256x128xbf16>, vector<8x128xf32> -> vector<8x128xf32>
    %c0_15 = arith.constant 0 : index
    %c0_16 = arith.constant 0 : index
    %20 = vector.load %arg7[%c0_15, %c0_16] : memref<1x128xf32, #tpu.memory_space<vmem>>, vector<1x128xf32>
    %21 = vector.broadcast %20 : vector<1x128xf32> to vector<8x128xf32>
    %22 = arith.addf %19, %21 : vector<8x128xf32>
    %c0_17 = arith.constant 0 : index
    %c0_18 = arith.constant 0 : index
    %23 = vector.load %arg8[%c0_17, %c0_18] : memref<8x128xf32, #tpu.memory_space<vmem>>, vector<8x128xf32>
    tpu.vector_store %arg8[%c0_17, %c0_18], %22 {strides = array<i32>} : memref<8x128xf32, #tpu.memory_space<vmem>>, vector<8x128xf32>,
    return
  }
  func.func @transform_0(%arg0: i32) -> (i32, i32) {
    %c0_i32 = arith.constant 0 : i32
    %c0_i32_0 = arith.constant 0 : i32
    return %arg0, %c0_i32 : i32, i32
  }
  func.func @transform_1(%arg0: i32) -> (i32, i32) {
    %c0_i32 = arith.constant 0 : i32
    %c0_i32_0 = arith.constant 0 : i32
    %c0_i32_1 = arith.constant 0 : i32
    return %c0_i32, %c0_i32_0 : i32, i32
  }
  func.func @transform_2(%arg0: i32) -> (i32, i32) {
    %c0_i32 = arith.constant 0 : i32
    %c0_i32_0 = arith.constant 0 : i32
    %c0_i32_1 = arith.constant 0 : i32
    return %c0_i32, %c0_i32_0 : i32, i32
  }
  func.func @transform_3(%arg0: i32) -> (i32, i32) {
    %c0_i32 = arith.constant 0 : i32
    %c0_i32_0 = arith.constant 0 : i32
    %c0_i32_1 = arith.constant 0 : i32
    return %c0_i32, %c0_i32_0 : i32, i32
  }
  func.func @transform_4(%arg0: i32) -> (i32, i32) {
    %c0_i32 = arith.constant 0 : i32
    %c0_i32_0 = arith.constant 0 : i32
    %c0_i32_1 = arith.constant 0 : i32
    return %c0_i32, %c0_i32_0 : i32, i32
  }
  func.func @transform_5(%arg0: i32) -> (i32, i32) {
    %c0_i32 = arith.constant 0 : i32
    %c0_i32_0 = arith.constant 0 : i32
    %c0_i32_1 = arith.constant 0 : i32
    return %c0_i32, %c0_i32_0 : i32, i32
  }
  func.func @transform_6(%arg0: i32) -> (i32, i32) {
    %c0_i32 = arith.constant 0 : i32
    %c0_i32_0 = arith.constant 0 : i32
    %c0_i32_1 = arith.constant 0 : i32
    return %c0_i32, %c0_i32_0 : i32, i32
  }
  func.func @transform_7(%arg0: i32) -> (i32, i32) {
    %c0_i32 = arith.constant 0 : i32
    %c0_i32_0 = arith.constant 0 : i32
    return %arg0, %c0_i32 : i32, i32
  }
}

</mosaic_0001>

<bundles_post_ra>
// kernel: tpu_custom_call.1
= control target key start
LH: loop header
LB: loop body
LE: loop exit
PB: predicated region body
PF: predicated region fallthrough
CT: control target
= control target key end

     0   :  { %12 = vsyncpa [#allocation3], 0  ;;  %s1145_s0 = inlined_call_operand.hbm [shape: f32[8,64], index: 0, kind: input, shape index: {}]   ;;  %s1146_s1 = inlined_call_operand.hbm [shape: bf16[64,256], index: 1, kind: input, shape index: {}]   ;;  %s1147_s2 = inlined_call_operand.hbm [shape: f32[1,256], index: 2, kind: input, shape index: {}]   ;;  %s1148_s3 = inlined_call_operand.hbm [shape: bf16[256,256], index: 3, kind: input, shape index: {}]   ;;  %s1149_s4 = inlined_call_operand.vmem [shape: f32[1,256], index: 4, kind: input, shape index: {}]   ;;  %s1150_s5 = inlined_call_operand.hbm [shape: bf16[256,128], index: 5, kind: input, shape index: {}]   ;;  %s1151_s6 = inlined_call_operand.vmem [shape: f32[1,128], index: 6, kind: input, shape index: {}]   ;;  %s1152_s7 = inlined_call_operand.hbm [shape: f32[8,128], index: 7, kind: output, shape index: {}]  }
   0x1   :  { %13 = vsyncpa [#allocation6], 0 }
   0x2   :  { %14 = vsyncpa [#allocation9], 0  ;;  %s31_s26 = sshll.u32 %s1146_s1, 4  ;;  %s32_s26 = int_to_ptr.hbm [resolvable:$true] %s31_s26 }
   0x3   :  { %15 = vsyncpa [#allocation4], 0  ;;  %s1069_s27 = smov [#allocation5]   ;;  %s55_s8 = sshll.u32 %s1148_s3, 4  ;;  %s56_s8 = int_to_ptr.hbm [resolvable:$true] %s55_s8 }
   0x4   :  { %s33_s28 = sshll.u32 %s1069_s27, 4  ;;  %s1070_s9 = smov 128   ;;  %s34_s28 = int_to_ptr.vmem [resolvable:$true] %s33_s28 }
   0x5   :  { %s1071_s10 = smov 8   ;;  %s1072_s11 = smov [#allocation8]  }
   0x6   :  { %39 = dma.hbm_to_vmem [thread:$0]  %s32_s26, 1024, %s34_s28, [#allocation6], %s1070_s9, %s1070_s9, %s1071_s10  }
   0x7   :  { %s57_s12 = sshll.u32 %s1072_s11, 4  ;;  %s21_s15 = sshll.u32 %s1145_s0, 4  ;;  %s58_s12 = int_to_ptr.vmem [resolvable:$true] %s57_s12  ;;  %s22_s15 = int_to_ptr.hbm [resolvable:$true] %s21_s15 }
   0x8   :  { %63 = dma.hbm_to_vmem [thread:$0]  %s56_s8, 4096, %s58_s12, [#allocation9], %s1070_s9, %s1070_s9, %s1071_s10  }
   0x9   :  { %s45_s17 = sshll.u32 %s1147_s2, 4  ;;  %s1073_s18 = smov [#allocation2]   ;;  %s46_s17 = int_to_ptr.hbm [resolvable:$true] %s45_s17 }
   0xa   :  { %s23_s19 = sshll.u32 %s1073_s18, 4  ;;  %s1074_s3 = smov [#allocation7]   ;;  %s24_s19 = int_to_ptr.vmem [resolvable:$true] %s23_s19 }
   0xb   :  { %26 = dma.hbm_to_vmem [thread:$0]  %s22_s15, 128, %s24_s19, [#allocation3]  }
   0xc   :  { %s47_s20 = sshll.u32 %s1074_s3, 4  ;;  %s70_s23 = sshll.u32 %s1150_s5, 4  ;;  %s48_s20 = int_to_ptr.vmem [resolvable:$true] %s47_s20  ;;  %s71_s23 = int_to_ptr.hbm [resolvable:$true] %s70_s23 }
   0xd   :  { %50 = dma.hbm_to_vmem [thread:$0]  %s46_s17, 32, %s48_s20, [#allocation6]  }
   0xe   :  { %s1075_s0 = smov [#allocation10]   ;;  %s1076_s25 = smov 64  }
   0xf   :  { %s72_s24 = sshll.u32 %s1075_s0, 4  ;;  %s1077_s26 = smov 4   ;;  %s73_s24 = int_to_ptr.vmem [resolvable:$true] %s72_s24 }
  0x10   :  { %78 = dma.hbm_to_vmem [thread:$0]  %s71_s23, 2048, %s73_s24, [#allocation9], %s1076_s25, %s1076_s25, %s1077_s26  }
  0x11   :  { %1061 = dma.done.wait [#allocation3], 128  }
  0x12   :  { %1062 = vsyncadd [#allocation3], 4294967168 }
  0x13   :  { %1063 = dma.done.wait [#allocation6], 1056  }
  0x14   :  { %1064 = vsyncadd [#allocation6], 4294966240 }
  0x15   :  { %1065 = dma.done.wait [#allocation9], 6144  }
  0x16   :  { %1066 = vsyncadd [#allocation9], 4294961152  ;;  %v650_v0 = vld [vmem:[#allocation5 + $0x30] sm:$0xf]  ;;  %v857_v1 = vld [vmem:[#allocation5 + $0x34] sm:$0xf0] }
  0x17   :  { %v856_v2 = vld [vmem:[#allocation5 + $0x34] sm:$0xf]  ;;  %v651_v3 = vor.u32 %v857_v1, %v650_v0  ;;  %v652_v4 = vld [vmem:[#allocation5 + $0x38] sm:$0xf0]  ;;  %v642_v5 = vld [vmem:[#allocation5 + $0x20] sm:$0xf] }
  0x18   :  { %v855_v6 = vld [vmem:[#allocation5 + $0x24] sm:$0xf0]  ;;  %v655_v7 = vor.u32 %v856_v2, %v652_v4  ;;  %v854_v8 = vld [vmem:[#allocation5 + $0x24] sm:$0xf]  ;;  %v644_v9 = vld [vmem:[#allocation5 + $0x28] sm:$0xf0] }
  0x19   :  { %166 = vmatpush.bf16.msra.mxu0 %v651_v3  ;;  %v643_v10 = vor.u32 %v855_v6, %v642_v5  ;;  %v647_v11 = vor.u32 %v854_v8, %v644_v9  ;;  %v634_v12 = vld [vmem:[#allocation5 + $0x10] sm:$0xf]  ;;  %v853_v13 = vld [vmem:[#allocation5 + $0x14] sm:$0xf0]  ;;  %v852_v14 = vld [vmem:[#allocation5 + $0x14] sm:$0xf] }
  0x1a   :  { %179 = vmatpush.bf16.msra.mxu1 %v655_v7  ;;  %v636_v15 = vld [vmem:[#allocation5 + $0x18] sm:$0xf0]  ;;  %v716_v16 = vld [vmem:[#allocation8 + $0x70] sm:$0xf]  ;;  %v626_v17 = vld [vmem:[#allocation5] sm:$0xf]  ;;  %v635_v21 = vor.u32 %v853_v13, %v634_v12 }
  0x1b   :  { %v873_v18 = vld [vmem:[#allocation8 + $0x74] sm:$0xf0]  ;;  %v780_v19 = vld [vmem:[#allocation8 + $0xf0] sm:$0xf]  ;;  %v851_v22 = vld [vmem:[#allocation5 + $0x4] sm:$0xf0]  ;;  %v639_v27 = vor.u32 %v852_v14, %v636_v15 }
  0x1c   :  { %v889_v20 = vld [vmem:[#allocation8 + $0xf4] sm:$0xf0]  ;;  %v850_v23 = vld [vmem:[#allocation5 + $0x4] sm:$0xf]  ;;  %v628_v24 = vld [vmem:[#allocation5 + $0x8] sm:$0xf0]  ;;  %v717_v25 = vor.u32 %v873_v18, %v716_v16  ;;  %v627_v39 = vor.u32 %v851_v22, %v626_v17 }
  0x1d   :  { %167 = vmatpush.bf16.msra.mxu0 %v643_v10  ;;  %v781_v26 = vor.u32 %v889_v20, %v780_v19  ;;  %v872_v28 = vld [vmem:[#allocation8 + $0x74] sm:$0xf]  ;;  %v708_v29 = vld [vmem:[#allocation8 + $0x60] sm:$0xf]  ;;  %v871_v30 = vld [vmem:[#allocation8 + $0x64] sm:$0xf0]  ;;  %v631_v43 = vor.u32 %v850_v23, %v628_v24 }
  0x1e   :  { %180 = vmatpush.bf16.msra.mxu1 %v647_v11  ;;  %390 = vmatpush.bf16.msra.mxu2 %v717_v25  ;;  %v718_v31 = vld [vmem:[#allocation8 + $0x78] sm:$0xf0]  ;;  %v709_v32 = vor.u32 %v871_v30, %v708_v29  ;;  %v772_v33 = vld [vmem:[#allocation8 + $0xe0] sm:$0xf]  ;;  %v887_v34 = vld [vmem:[#allocation8 + $0xe4] sm:$0xf0] }
  0x1f   :  { %403 = vmatpush.bf16.msra.mxu3 %v781_v26  ;;  %v102_v35 = vld [vmem:[#allocation2] sm:$0xff]  ;;  %v773_v38 = vor.u32 %v887_v34, %v772_v33  ;;  %v700_v40 = vld [vmem:[#allocation8 + $0x50] sm:$0xf]  ;;  %v721_v44 = vor.u32 %v872_v28, %v718_v31  ;;  %v870_v47 = vld [vmem:[#allocation8 + $0x64] sm:$0xf]  ;;  %vm158_vm0 = vcmask 523264  }
  0x20   :  { %v888_v36 = vld [vmem:[#allocation8 + $0xf4] sm:$0xf]  ;;  %v782_v37 = vld [vmem:[#allocation8 + $0xf8] sm:$0xf0]  ;;  %v869_v41 = vld [vmem:[#allocation8 + $0x54] sm:$0xf0]  ;;  %v103_v51 = vpack.c.bf16 %v102_v35, %v102_v35 }
  0x21   :  { %168 = vmatpush.bf16.msra.mxu0 %v635_v21  ;;  %v764_v42 = vld [vmem:[#allocation8 + $0xd0] sm:$0xf]  ;;  %v885_v45 = vld [vmem:[#allocation8 + $0xd4] sm:$0xf0]  ;;  %v785_v46 = vor.u32 %v888_v36, %v782_v37  ;;  %v710_v48 = vld [vmem:[#allocation8 + $0x68] sm:$0xf0]  ;;  %v701_v50 = vor.u32 %v869_v41, %v700_v40 }
  0x22   :  { %181 = vmatpush.bf16.msra.mxu1 %v639_v27  ;;  %391 = vmatpush.bf16.msra.mxu2 %v709_v32  ;;  %v886_v49 = vld [vmem:[#allocation8 + $0xe4] sm:$0xf]  ;;  %v774_v52 = vld [vmem:[#allocation8 + $0xe8] sm:$0xf0]  ;;  %v765_v53 = vor.u32 %v885_v45, %v764_v42  ;;  %v692_v54 = vld [vmem:[#allocation8 + $0x40] sm:$0xf]  ;;  %v713_v58 = vor.u32 %v870_v47, %v710_v48 }
  0x23   :  { %404 = vmatpush.bf16.msra.mxu3 %v773_v38  ;;  %v867_v55 = vld [vmem:[#allocation8 + $0x44] sm:$0xf0]  ;;  %v756_v56 = vld [vmem:[#allocation8 + $0xc0] sm:$0xf]  ;;  %v777_v59 = vor.u32 %v886_v49, %v774_v52  ;;  %v868_v60 = vld [vmem:[#allocation8 + $0x54] sm:$0xf] }
  0x24   :  { %v883_v57 = vld [vmem:[#allocation8 + $0xc4] sm:$0xf0]  ;;  %v702_v61 = vld [vmem:[#allocation8 + $0x58] sm:$0xf0]  ;;  %v884_v62 = vld [vmem:[#allocation8 + $0xd4] sm:$0xf]  ;;  %v693_v63 = vor.u32 %v867_v55, %v692_v54 }
  0x25   :  { %169 = vmatpush.bf16.msra.mxu0 %v627_v39  ;;  %v766_v0 = vld [vmem:[#allocation8 + $0xd8] sm:$0xf0]  ;;  %v757_v1 = vor.u32 %v883_v57, %v756_v56  ;;  %v684_v2 = vld [vmem:[#allocation8 + $0x30] sm:$0xf]  ;;  %v865_v3 = vld [vmem:[#allocation8 + $0x34] sm:$0xf0]  ;;  %v705_v6 = vor.u32 %v868_v60, %v702_v61 }
  0x26   :  { %182 = vmatpush.bf16.msra.mxu1 %v631_v43  ;;  %392 = vmatpush.bf16.msra.mxu2 %v701_v50  ;;  %v748_v4 = vld [vmem:[#allocation8 + $0xb0] sm:$0xf]  ;;  %v881_v5 = vld [vmem:[#allocation8 + $0xb4] sm:$0xf0]  ;;  %v866_v7 = vld [vmem:[#allocation8 + $0x44] sm:$0xf]  ;;  %v769_v8 = vor.u32 %v884_v62, %v766_v0  ;;  %v685_v12 = vor.u32 %v865_v3, %v684_v2 }
  0x27   :  { %405 = vmatpush.bf16.msra.mxu3 %v765_v53  ;;  %v694_v9 = vld [vmem:[#allocation8 + $0x48] sm:$0xf0]  ;;  %v882_v10 = vld [vmem:[#allocation8 + $0xc4] sm:$0xf]  ;;  %v749_v13 = vor.u32 %v881_v5, %v748_v4  ;;  %v676_v14 = vld [vmem:[#allocation8 + $0x20] sm:$0xf] }
  0x28   :  { %656 = vmatmul.msk.bf16.vlgmr.msra.gmra.mxu0 %vm158_vm0, %v103_v51  ;;  %v758_v11 = vld [vmem:[#allocation8 + $0xc8] sm:$0xf0]  ;;  %v863_v15 = vld [vmem:[#allocation8 + $0x24] sm:$0xf0]  ;;  %v740_v16 = vld [vmem:[#allocation8 + $0xa0] sm:$0xf]  ;;  %v697_v18 = vor.u32 %v866_v7, %v694_v9 }
  0x29   :  { %416 = vmatpush.bf16.msrb.mxu0 %v721_v44  ;;  %657 = vmatmul.msk.bf16.vlgmr.msra.gmra.mxu1 %vm158_vm0, %v103_v51  ;;  %v879_v17 = vld [vmem:[#allocation8 + $0xa4] sm:$0xf0]  ;;  %v761_v19 = vor.u32 %v882_v10, %v758_v11  ;;  %v864_v20 = vld [vmem:[#allocation8 + $0x34] sm:$0xf]  ;;  %v686_v21 = vld [vmem:[#allocation8 + $0x38] sm:$0xf0]  ;;  %v677_v22 = vor.u32 %v863_v15, %v676_v14 }
  0x2a   :  { %429 = vmatpush.bf16.msrb.mxu1 %v785_v46  ;;  %393 = vmatpush.bf16.msra.mxu2 %v693_v63  ;;  %v880_v23 = vld [vmem:[#allocation8 + $0xb4] sm:$0xf]  ;;  %v750_v24 = vld [vmem:[#allocation8 + $0xb8] sm:$0xf0]  ;;  %v741_v25 = vor.u32 %v879_v17, %v740_v16  ;;  %v689_v26 = vor.u32 %v864_v20, %v686_v21  ;;  %v862_v28 = vld [vmem:[#allocation8 + $0x24] sm:$0xf] }
  0x2b   :  { %406 = vmatpush.bf16.msra.mxu3 %v757_v1  ;;  %v753_v27 = vor.u32 %v880_v23, %v750_v24  ;;  %v678_v29 = vld [vmem:[#allocation8 + $0x28] sm:$0xf0]  ;;  %v878_v30 = vld [vmem:[#allocation8 + $0xa4] sm:$0xf]  ;;  %v668_v34 = vld [vmem:[#allocation8 + $0x10] sm:$0xf] }
  0x2c   :  { %v742_v31 = vld [vmem:[#allocation8 + $0xa8] sm:$0xf0]  ;;  %v681_v32 = vor.u32 %v862_v28, %v678_v29  ;;  %v861_v35 = vld [vmem:[#allocation8 + $0x14] sm:$0xf0]  ;;  %v732_v36 = vld [vmem:[#allocation8 + $0x90] sm:$0xf] }
  0x2d   :  { %417 = vmatpush.bf16.msrb.mxu0 %v713_v58  ;;  %v745_v33 = vor.u32 %v878_v30, %v742_v31  ;;  %v669_v37 = vor.u32 %v861_v35, %v668_v34  ;;  %v877_v38 = vld [vmem:[#allocation8 + $0x94] sm:$0xf0]  ;;  %v860_v39 = vld [vmem:[#allocation8 + $0x14] sm:$0xf]  ;;  %v670_v40 = vld [vmem:[#allocation8 + $0x18] sm:$0xf0] }
  0x2e   :  { %430 = vmatpush.bf16.msrb.mxu1 %v777_v59  ;;  %394 = vmatpush.bf16.msra.mxu2 %v685_v12  ;;  %v733_v41 = vor.u32 %v877_v38, %v732_v36  ;;  %v673_v42 = vor.u32 %v860_v39, %v670_v40  ;;  %v876_v43 = vld [vmem:[#allocation8 + $0x94] sm:$0xf]  ;;  %v734_v44 = vld [vmem:[#allocation8 + $0x98] sm:$0xf0]  ;;  %v660_v46 = vld [vmem:[#allocation8] sm:$0xf] }
  0x2f   :  { %407 = vmatpush.bf16.msra.mxu3 %v749_v13  ;;  %v737_v45 = vor.u32 %v876_v43, %v734_v44  ;;  %v859_v47 = vld [vmem:[#allocation8 + $0x4] sm:$0xf0]  ;;  %v724_v48 = vld [vmem:[#allocation8 + $0x80] sm:$0xf]  ;;  %v858_v51 = vld [vmem:[#allocation8 + $0x4] sm:$0xf] }
  0x30   :  { %v661_v49 = vor.u32 %v859_v47, %v660_v46  ;;  %v875_v50 = vld [vmem:[#allocation8 + $0x84] sm:$0xf0]  ;;  %v662_v52 = vld [vmem:[#allocation8 + $0x8] sm:$0xf0]  ;;  %v874_v55 = vld [vmem:[#allocation8 + $0x84] sm:$0xf] }
  0x31   :  { %418 = vmatpush.bf16.msrb.mxu0 %v705_v6  ;;  %v725_v53 = vor.u32 %v875_v50, %v724_v48  ;;  %v665_v54 = vor.u32 %v858_v51, %v662_v52  ;;  %v726_v56 = vld [vmem:[#allocation8 + $0x88] sm:$0xf0]  ;;  %v905_v58 = vld [vmem:[#allocation10 + $0x78] sm:$0xff]  ;;  %v904_v60 = vld [vmem:[#allocation10 + $0x70] sm:$0xff]  ;;  %s1078_s28 = smov [#allocation11]   ;;  %s612_s9 = sshll.u32 %s1152_s7, 4  ;;  %s613_s9 = int_to_ptr.hbm [resolvable:$true] %s612_s9 }
  0x32   :  { %431 = vmatpush.bf16.msrb.mxu1 %v769_v8  ;;  %395 = vmatpush.bf16.msra.mxu2 %v677_v22  ;;  %v729_v57 = vor.u32 %v874_v55, %v726_v56  ;;  %v897_v59 = vld [vmem:[#allocation10 + $0x38] sm:$0xff]  ;;  %v896_v61 = vld [vmem:[#allocation10 + $0x30] sm:$0xff]  ;;  %v903_v62 = vld [vmem:[#allocation10 + $0x68] sm:$0xff]  ;;  %s610_s29 = sshll.u32 %s1078_s28, 4  ;;  %s611_s29 = int_to_ptr.vmem [resolvable:$true] %s610_s29 }
  0x33   :  { %408 = vmatpush.bf16.msra.mxu3 %v741_v25  ;;  %v895_v63 = vld [vmem:[#allocation10 + $0x28] sm:$0xff]  ;;  %v902_v0 = vld [vmem:[#allocation10 + $0x60] sm:$0xff]  ;;  %v901_v2 = vld [vmem:[#allocation10 + $0x58] sm:$0xff] }
  0x34   :  { %v894_v1 = vld [vmem:[#allocation10 + $0x20] sm:$0xff]  ;;  %v112_v3 = vld [vmem:[#allocation7] sm:$0x3]  ;;  %v900_v4 = vld [vmem:[#allocation10 + $0x50] sm:$0xff] }
  0x35   :  { %419 = vmatpush.bf16.msrb.mxu0 %v697_v18  ;;  %v114_v5 = vperm.slane %v112_v3, 0  ;;  %v115_v6 = vperm.slane %v112_v3, 1  ;;  %v893_v17 = vld [vmem:[#allocation10 + $0x18] sm:$0xff]  ;;  %v899_v18 = vld [vmem:[#allocation10 + $0x48] sm:$0xff]  ;;  %v898_v20 = vld [vmem:[#allocation10 + $0x40] sm:$0xff] }
  0x36   :  { %432 = vmatpush.bf16.msrb.mxu1 %v761_v19  ;;  %396 = vmatpush.bf16.msra.mxu2 %v669_v37  ;;  %v892_v19 = vld [vmem:[#allocation10 + $0x10] sm:$0xff]  ;;  %v891_v21 = vld [vmem:[#allocation10 + $0x8] sm:$0xff]  ;;  %v890_v22 = vld [vmem:[#allocation10] sm:$0xff] }
  0x37   :  { %409 = vmatpush.bf16.msra.mxu3 %v733_v41  ;;  %v224_v23 = vld [vmem:[%s1149_s4] sm:$0x3] }
  0x38   :  { %v227_v24 = vperm.slane %v224_v23, 1  ;;  %v226_v29 = vperm.slane %v224_v23, 0  ;;  %v916_v43 = vld [vmem:[%s1151_s6] ss:$0 sm:$0xff] }
  0x39   :  { %420 = vmatpush.bf16.msrb.mxu0 %v689_v26 }
  0x3a   :  { %433 = vmatpush.bf16.msrb.mxu1 %v753_v27  ;;  %397 = vmatpush.bf16.msra.mxu2 %v661_v49 }
  0x3b   :  { %410 = vmatpush.bf16.msra.mxu3 %v725_v53 }
  0x3d   :  { %421 = vmatpush.bf16.msrb.mxu0 %v681_v32 }
  0x3e   :  { %434 = vmatpush.bf16.msrb.mxu1 %v745_v33  ;;  %578 = vmatpush.bf16.msrb.mxu2 %v897_v59 }
  0x3f   :  { %591 = vmatpush.bf16.msrb.mxu3 %v905_v58 }
  0x41   :  { %422 = vmatpush.bf16.msrb.mxu0 %v673_v42 }
  0x42   :  { %435 = vmatpush.bf16.msrb.mxu1 %v737_v45  ;;  %579 = vmatpush.bf16.msrb.mxu2 %v896_v61 }
  0x43   :  { %592 = vmatpush.bf16.msrb.mxu3 %v904_v60 }
  0x45   :  { %423 = vmatpush.bf16.msrb.mxu0 %v665_v54 }
  0x46   :  { %436 = vmatpush.bf16.msrb.mxu1 %v729_v57  ;;  %580 = vmatpush.bf16.msrb.mxu2 %v895_v63 }
  0x47   :  { %593 = vmatpush.bf16.msrb.mxu3 %v903_v62 }
  0x4a   :  { %581 = vmatpush.bf16.msrb.mxu2 %v894_v1 }
  0x4b   :  { %594 = vmatpush.bf16.msrb.mxu3 %v902_v0 }
  0x4e   :  { %582 = vmatpush.bf16.msrb.mxu2 %v893_v17 }
  0x4f   :  { %595 = vmatpush.bf16.msrb.mxu3 %v901_v2 }
  0x52   :  { %583 = vmatpush.bf16.msrb.mxu2 %v892_v19 }
  0x53   :  { %596 = vmatpush.bf16.msrb.mxu3 %v900_v4 }
  0x56   :  { %584 = vmatpush.bf16.msrb.mxu2 %v891_v21 }
  0x57   :  { %597 = vmatpush.bf16.msrb.mxu3 %v899_v18 }
  0x5a   :  { %585 = vmatpush.bf16.msrb.mxu2 %v890_v22 }
  0x5b   :  { %598 = vmatpush.bf16.msrb.mxu3 %v898_v20 }
  0xa5   :  { %v171_v7 = vpop.f32.mrf.mxu0 }
  0xa6   :  { %v172_v8 = vadd.f32 %v171_v7, %v114_v5  ;;  %v184_v9 = vpop.f32.mrf.mxu1 }
  0xa7   :  { %v185_v10 = vadd.f32 %v184_v9, %v115_v6 }
  0xa8   :  { %v188_v11 = vmax.f32 %v172_v8, 0.0 }
  0xa9   :  { %v189_v12 = vmax.f32 %v185_v10, 0.0 }
  0xaa   :  { %v190_v13 = vpack.c.bf16 %v188_v11, %v188_v11 }
  0xab   :  { %v191_v14 = vpack.c.bf16 %v189_v12, %v189_v12 }
  0xac   :  { %398 = vmatmul.bf16.vlgmr.msra.gmra.mxu2 %v190_v13  ;;  %424 = vmatmul.bf16.vlgmr.msrb.gmra.mxu0 %v190_v13 }
  0xad   :  { %411 = vmatmul.bf16.vlgmr.msra.gmra.mxu3 %v191_v14  ;;  %437 = vmatmul.bf16.vlgmr.msrb.gmra.mxu1 %v191_v14  ;;  %v173_v15 = vpop.f32.mrf.mxu0 }
  0xae   :  { %v186_v16 = vpop.f32.mrf.mxu1 }
 0x129   :  { %v425_v25 = vpop.f32.mrf.mxu0 }
 0x12a   :  { %v426_v26 = vadd.f32 %v425_v25, %v227_v24  ;;  %v438_v27 = vpop.f32.mrf.mxu1 }
 0x12c   :  { %v439_v28 = vadd.f32 %v438_v27, %v426_v26 }
 0x12e   :  { %v443_v30 = vmax.f32 %v439_v28, 0.0 }
 0x12f   :  { %v399_v31 = vpop.f32.mrf.mxu2 }
 0x130   :  { %v445_v32 = vpack.c.bf16 %v443_v30, %v443_v30  ;;  %v400_v33 = vadd.f32 %v399_v31, %v226_v29  ;;  %v412_v34 = vpop.f32.mrf.mxu3 }
 0x131   :  { %v427_v35 = vpop.f32.mrf.mxu0 }
 0x132   :  { %v413_v36 = vadd.f32 %v412_v34, %v400_v33  ;;  %v440_v37 = vpop.f32.mrf.mxu1  ;;  %599 = vmatmul.bf16.vlgmr.msrb.gmra.mxu3 %v445_v32 }
 0x134   :  { %v442_v38 = vmax.f32 %v413_v36, 0.0 }
 0x136   :  { %v444_v39 = vpack.c.bf16 %v442_v38, %v442_v38 }
 0x137   :  { %v401_v40 = vpop.f32.mrf.mxu2 }
 0x138   :  { %v414_v41 = vpop.f32.mrf.mxu3  ;;  %586 = vmatmul.bf16.vlgmr.msrb.gmra.mxu2 %v444_v39 }
 0x1b5   :  { %v600_v42 = vpop.f32.mrf.mxu3 }
 0x1bb   :  { %v587_v44 = vpop.f32.mrf.mxu2 }
 0x1bc   :  { %v588_v45 = vadd.f32 %v916_v43, %v587_v44 }
 0x1bd   :  { %v602_v46 = vpop.f32.mrf.mxu3 }
 0x1be   :  { %v601_v47 = vadd.f32 %v600_v42, %v588_v45 }
 0x1c0   :  { %604 = vst [vmem:[#allocation11] sm:$0xff] %v601_v47 }
 0x1c1   :  { %615 = dma.vmem_to_hbm [thread:$0]  %s611_s29, 128, %s613_s9, [#allocation4]  }
 0x1c3   :  { %v589_v48 = vpop.f32.mrf.mxu2 }
 0x1c4   :  { %1067 = dma.done.wait [#allocation4], 128  }
 0x1c5   :  { %1068 = vsyncadd [#allocation4], 4294967168 }
 0x1c6   :  { %620 = vsyncpa [#allocation3], 1 }
 0x1c7   :  { %621 = vsyncpa [#allocation6], 1 }
 0x1c8   :  { %622 = vsyncpa [#allocation9], 1 }
 0x1c9   :  { %623 = vsyncpa [#allocation4], 1 }

</bundles_post_ra>
